<compile_context>
chip_gen: v6e
topology: v6e:2x2x1
jax: 0.10.0
libtpu: 0.0.40
codegen_flags: <defaults>
</compile_context>

<pallas_src>
import math

import jax
import jax.numpy as jnp
from jax import lax
from jax.experimental import pallas as pl
from jax.experimental.pallas import tpu as pltpu


# ----------------------------------------------------------------------------
# Parameter setup (deterministic, mirrors ALiBiPositionalEncoding.__init__)
# ----------------------------------------------------------------------------
def get_alibi_slopes(num_heads: int) -> jnp.ndarray:
    """Same math as ALiBiPositionalEncoding._get_alibi_slopes."""

    def get_slopes_power_of_2(n):
        start = 2 ** (-(2 ** (-(math.log2(n) - 3))))
        ratio = start
        return [start * ratio**i for i in range(n)]

    if math.log2(num_heads).is_integer():
        slopes = get_slopes_power_of_2(num_heads)
    else:
        closest_power_of_2 = 2 ** math.floor(math.log2(num_heads))
        slopes = get_slopes_power_of_2(closest_power_of_2)
        extra = get_slopes_power_of_2(2 * closest_power_of_2)
        slopes.extend(extra[0 : num_heads - closest_power_of_2])
        slopes = slopes[:num_heads]
    return jnp.asarray(slopes, dtype=jnp.float32)


# ----------------------------------------------------------------------------
# Pallas kernel: one (TQ, Sk) tile of one (b, h) score slab per grid step.
# ----------------------------------------------------------------------------
def _alibi_bias_add_kernel(slopes_ref, scores_ref, out_ref):
    # slopes_ref lives in SMEM (scalar prefetch); scores/out blocks are (TQ, Sk).
    h = pl.program_id(1)
    q_tile = pl.program_id(2)
    slope = slopes_ref[h]  # f32 scalar from SMEM

    tq, sk = scores_ref.shape
    row0 = q_tile * tq  # global offset of this query tile

    # relative_position = j - i, kept only where causal (j <= i), else 0
    i_idx = row0 + lax.broadcasted_iota(jnp.int32, (tq, sk), 0)
    j_idx = lax.broadcasted_iota(jnp.int32, (tq, sk), 1)
    rel = jnp.minimum(j_idx - i_idx, 0).astype(jnp.float32)

    # Compute bias in f32 then add in the scores' dtype (no f32 round-trip of
    # the scores themselves — keeps vreg pressure low for bf16 inputs).
    bias = (slope * rel).astype(out_ref.dtype)
    out_ref[...] = scores_ref[...] + bias


def _choose_tq(sq: int, sk: int, itemsize: int) -> int:
    """Largest power-of-2 query tile (multiple of 8) that divides sq and keeps
    4 pipeline buffers (2x in + 2x out) within ~16 MiB of scoped VMEM."""
    budget_bytes = 16 * 1024 * 1024
    max_rows = max(8, budget_bytes // (4 * sk * itemsize))
    for cand in (1024, 512, 256, 128, 64, 32, 16, 8):
        if cand <= max_rows and cand <= sq and sq % cand == 0:
            return cand
    # Fallback: no clean divisor — use the full dim (valid as a full-extent block).
    return sq


def alibi_apply_bias(attention_scores: jnp.ndarray, slopes: jnp.ndarray) -> jnp.ndarray:
    """attention_scores: (B, H, Sq, Sk). Returns scores + ALiBi bias."""
    B, H, Sq, Sk = attention_scores.shape

    # Glue: match PyTorch head-repeat behaviour if module heads != score heads.
    if slopes.shape[0] != H:
        if slopes.shape[0] < H:
            repeat_factor = (H + slopes.shape[0] - 1) // slopes.shape[0]
            slopes = jnp.tile(slopes, (repeat_factor,))
        slopes = slopes[:H]
    slopes = slopes.astype(jnp.float32)

    tq = _choose_tq(Sq, Sk, attention_scores.dtype.itemsize)
    n_q_tiles = pl.cdiv(Sq, tq)

    grid_spec = pltpu.PrefetchScalarGridSpec(
        num_scalar_prefetch=1,  # slopes -> SMEM
        grid=(B, H, n_q_tiles),
        in_specs=[
            # Squeeze the size-1 batch/head dims: kernel sees a (TQ, Sk) ref.
            pl.BlockSpec((None, None, tq, Sk), lambda b, h, q, slopes_ref: (b, h, q, 0)),
        ],
        out_specs=pl.BlockSpec(
            (None, None, tq, Sk), lambda b, h, q, slopes_ref: (b, h, q, 0)
        ),
    )

    return pl.pallas_call(
        _alibi_bias_add_kernel,
        out_shape=jax.ShapeDtypeStruct((B, H, Sq, Sk), attention_scores.dtype),
        grid_spec=grid_spec,
        # In-place bias add: scores (flat input index 1, after the prefetched
        # slopes at index 0) aliases output 0.
        input_output_aliases={1: 0},
        compiler_params=pltpu.CompilerParams(
            dimension_semantics=("parallel", "parallel", "arbitrary")
        ),
    )(slopes, attention_scores)


def alibi_forward(x, attention_scores=None, *, slopes=None):
    """Mirrors ALiBiPositionalEncoding.forward."""
    if attention_scores is not None:
        return alibi_apply_bias(attention_scores, slopes)
    return x  # input embeddings pass through unchanged


# ----------------------------------------------------------------------------
# Pure-JAX reference for a correctness check
# ----------------------------------------------------------------------------
def _reference(attention_scores, slopes):
    B, H, Sq, Sk = attention_scores.shape
    i = jnp.arange(Sq)[:, None]
    j = jnp.arange(Sk)[None, :]
    rel = jnp.minimum(j - i, 0).astype(jnp.float32)
    bias = slopes[:, None, None] * rel[None, :, :]  # (H, Sq, Sk)
    return attention_scores + bias[None, :, :, :].astype(attention_scores.dtype)


if __name__ == "__main__":
    d_model = 32
    num_heads = 8
    batch = 2
    seq_len = 128

    key = jax.random.PRNGKey(0)
    kx, ks = jax.random.split(key)
    x = jax.random.normal(kx, (batch, seq_len, d_model), dtype=jnp.float32)
    attention_scores = jax.random.normal(
        ks, (batch, num_heads, seq_len, seq_len), dtype=jnp.float32
    )

    slopes = get_alibi_slopes(num_heads)

    # Path 1: no attention scores -> x returned unchanged.
    out_x = alibi_forward(x, slopes=slopes)
    assert out_x.shape == x.shape

    # Path 2: bias applied to attention scores via the Pallas kernel.
    out = alibi_forward(x, attention_scores, slopes=slopes)
    out = jax.block_until_ready(out)

    ref = _reference(attention_scores, slopes)
    assert out.shape == attention_scores.shape
    assert jnp.allclose(out, ref, atol=1e-5, rtol=1e-5)

    print("KERNEL_OK")
</pallas_src>

<mosaic_0001>
module attributes {stable_mosaic.version = 11 : i64} {
  func.func @_alibi_bias_add_kernel(%arg0: i32, %arg1: i32, %arg2: i32, %arg3: memref<8xf32, #tpu.memory_space<smem>>, %arg4: memref<1x1x128x128xf32, #tpu.memory_space<vmem>>, %arg5: memref<1x1x128x128xf32, #tpu.memory_space<vmem>>) attributes {dimension_semantics = [#tpu.dimension_semantics<parallel>, #tpu.dimension_semantics<parallel>, #tpu.dimension_semantics<arbitrary>], iteration_bounds = array<i64: 2, 8, 1>, scalar_prefetch = 1 : i64, scratch_operands = 0 : i64, tpu.core_type = #tpu.core_type<tc>, window_params = [{transform_indices = @transform_0, window_bounds = array<i64: 1, 1, 128, 128>}, {transform_indices = @transform_1, window_bounds = array<i64: 1, 1, 128, 128>}]} {
    %0 = arith.index_cast %arg1 : i32 to index
    %1 = memref.load %arg3[%0] : memref<8xf32, #tpu.memory_space<smem>>
    %c128_i32 = arith.constant 128 : i32
    %2 = arith.muli %arg2, %c128_i32 : i32
    %3 = tpu.iota {dimensions = array<i32: 0>} : vector<128x128xi32>
    %4 = vector.broadcast %2 : i32 to vector<128x128xi32>
    %5 = arith.addi %4, %3 : vector<128x128xi32>
    %6 = tpu.iota {dimensions = array<i32: 1>} : vector<128x128xi32>
    %7 = arith.subi %6, %5 : vector<128x128xi32>
    %c0_i32 = arith.constant 0 : i32
    %8 = vector.broadcast %c0_i32 : i32 to vector<128x128xi32>
    %9 = arith.minsi %7, %8 : vector<128x128xi32>
    %10 = arith.sitofp %9 : vector<128x128xi32> to vector<128x128xf32>
    %11 = vector.broadcast %1 : f32 to vector<128x128xf32>
    %12 = arith.mulf %11, %10 : vector<128x128xf32>
    %c0 = arith.constant 0 : index
    %c0_0 = arith.constant 0 : index
    %c0_1 = arith.constant 0 : index
    %c0_2 = arith.constant 0 : index
    %13 = vector.load %arg4[%c0, %c0_0, %c0_1, %c0_2] : memref<1x1x128x128xf32, #tpu.memory_space<vmem>>, vector<1x1x128x128xf32>
    %14 = vector.shape_cast %13 : vector<1x1x128x128xf32> to vector<128x128xf32>
    %15 = arith.addf %14, %12 : vector<128x128xf32>
    %c0_3 = arith.constant 0 : index
    %c0_4 = arith.constant 0 : index
    %c0_5 = arith.constant 0 : index
    %c0_6 = arith.constant 0 : index
    %16 = vector.load %arg5[%c0_3, %c0_4, %c0_5, %c0_6] : memref<1x1x128x128xf32, #tpu.memory_space<vmem>>, vector<1x1x128x128xf32>
    %17 = vector.shape_cast %16 : vector<1x1x128x128xf32> to vector<128x128xf32>
    %18 = vector.shape_cast %15 : vector<128x128xf32> to vector<1x1x128x128xf32>
    tpu.vector_store %arg5[%c0_3, %c0_4, %c0_5, %c0_6], %18 {strides = array<i32>} : memref<1x1x128x128xf32, #tpu.memory_space<vmem>>, vector<1x1x128x128xf32>,
    return
  }
  func.func @transform_0(%arg0: i32, %arg1: i32, %arg2: i32, %arg3: memref<8xf32, #tpu.memory_space<smem>>) -> (i32, i32, i32, i32) {
    %c0_i32 = arith.constant 0 : i32
    %c0_i32_0 = arith.constant 0 : i32
    return %arg0, %arg1, %arg2, %c0_i32 : i32, i32, i32, i32
  }
  func.func @transform_1(%arg0: i32, %arg1: i32, %arg2: i32, %arg3: memref<8xf32, #tpu.memory_space<smem>>) -> (i32, i32, i32, i32) {
    %c0_i32 = arith.constant 0 : i32
    %c0_i32_0 = arith.constant 0 : i32
    return %arg0, %arg1, %arg2, %c0_i32 : i32, i32, i32, i32
  }
}

</mosaic_0001>

<bundles_post_ra>
// kernel: tpu_custom_call.1
= control target key start
LH: loop header
LB: loop body
LE: loop exit
PB: predicated region body
PF: predicated region fallthrough
CT: control target
= control target key end

     0   :  { %s1017_s0 = inlined_call_operand.vmem [shape: f32[8], index: 0, kind: input, shape index: {}]   ;;  %s1018_s1 = inlined_call_operand.hbm [shape: f32[2,8,128,128], index: 1, kind: input, shape index: {}, may-alias: {1,2}]   ;;  %s1019_s2 = inlined_call_operand.hbm [shape: f32[2,8,128,128], index: 2, kind: output, shape index: {}, may-alias: {1,2}]  }
   0x1   :  { %s7_s11 = sshll.u32 %s1017_s0, 4  ;;  %s8_s11 = int_to_ptr.vmem [resolvable:$true] %s7_s11 }
   0x2   :  { %s589_s12 = scalar_lea.vmem %s8_s11, 16  ;;  %p594_p1 = scmp.lt.s32.totalorder %s8_s11, %s8_s11 }
   0x3   :  { %p590_p0 = scmp.ne.s32.totalorder %s8_s11, %s589_s12  ;;  %p595_p2 = scmp.lt.s32.totalorder %s589_s12, %s589_s12 }
   0x5   :  { %p596_p3 = por %p595_p2, %p594_p1 }
   0x7   :  { %p597_p4 = pnand %p596_p3, %p590_p0 }
   0x9   :  { %600 = shalt.err (!%p597_p4)  }
   0xa   :  { %s729_s13 = smov [#allocation3]  }
   0xb   :  { %10 = dma.vmem_to_smem %s8_s11, 16, %s729_s13, [#allocation2] }
   0xc   :  { %687 = dma.done.wait [#allocation2], 16 }
   0xd   :  { %688 = vsyncadd [#allocation2], 4294967280 }
   0xe   :  { %12 = sfence }
   0xf   :  { %13 = vsyncpa [#allocation5], 0 }
  0x10   :  { %15 = vsyncpa [#allocation5 + $0x1], 0 }
  0x11   :  { %16 = vsyncpa [#allocation6], 0 }
  0x12   :  { %18 = vsyncpa [#allocation6 + $0x1], 0  ;;  %s754_s14 = smov 0   ;;  %s756_s0 = smov 0  }
  0x13   :  { %s758_s15 = smov 0   ;;  %s760_s16 = smov 0  }
  0x14   :  { %s762_s17 = smov 0   ;;  %s764_s18 = smov 0  }
  0x15   :  { %s766_s19 = smov 0   ;;  %s768_s20 = smov 0  }
  0x16 LB: > { %s457_s21 = sadd.s32 4294967295, %s727_s20   ;;  %s458_s22 = sadd.s32 4294967294, %s727_s20   ;;  %s727_s20 = sphi %s768_s20, %s24_s20   ;;  %s723_s19 = sphi %s766_s19, %s1031_s19   ;;  %s719_s18 = sphi %s764_s18, %s1030_s18   ;;  %s715_s17 = sphi %s762_s17, %s1029_s17   ;;  %s711_s16 = sphi %s760_s16, %s1028_s16   ;;  %s707_s15 = sphi %s758_s15, %s1027_s15   ;;  %s703_s0 = sphi %s756_s0, %s1026_s0   ;;  %s699_s14 = sphi %s754_s14, %s1025_s14  }
  0x17   : > { %s39_s23 = sadd.s32 1, %s719_s18  ;;  %s43_s24 = sadd.s32 1, %s723_s19 }
  0x18   : > { %p41_p5 = scmp.ge.s32.totalorder %s39_s23, 8  ;;  %s54_s25 = sadd.s32 1, %s707_s15 }
  0x19   : > { %p61_p6 = scmp.ne.s32.totalorder %s707_s15, %s703_s0  ;;  %p62_p7 = scmp.eq.s32.totalorder %s727_s20, 0 }
  0x1a   : > { %s1033_s23 = smov (%p41_p5, %s39_s23), 0  ;;  %s1035_s24 = smov (!%p41_p5, %s43_s24), %s723_s19 }
  0x1b   : > { %s48_s26 = ssub.s32 %s719_s18, %s1033_s23  ;;  %p807_p8 = por %p62_p7, %p61_p6 }
  0x1c   : > { %p45_p9 = scmp.ge.s32.totalorder %s1035_s24, 2  ;;  %p67_p10 = scmp.ne.s32.totalorder %s703_s0, %s699_s14 }
  0x1d   : > { %p68_p11 = scmp.eq.s32.totalorder %s457_s21, 0  ;;  %p95_p12 = scmp.eq.s32.totalorder %s457_s21, 15 }
  0x1e   : > { %s1037_s24 = smov (%p45_p9, %s1035_s24), 0  ;;  %p101_p1 = scmp.eq.s32.totalorder %s458_s22, 15 }
  0x1f   : > { %p815_p13 = por %p68_p11, %p67_p10  ;;  %p819_p0 = por %p95_p12, %p61_p6 }
  0x20   : > { %s47_s30 = ssub.s32 %s723_s19, %s1037_s24  ;;  %p825_p3 = por %p101_p1, %p67_p10 }
  0x21   : > { %s49_s3 = sor.u32 %s48_s26, %s47_s30  ;;  %p518_p4 = scmp.lt.s32.totalorder %s727_s20, 16 }
  0x22   : > { %p52_p2 = scmp.eq.s32.totalorder %s49_s3, 0  ;;  %s121_s5 = sand.u32 1, %s707_s15  }
  0x23   : > { %s461_s7 = sshll.u32 %s121_s5, 7  ;;  %s462_s8 = sshll.u32 %s719_s18, 4 }
  0x24   : > { %s832_s6 = scalar_select %p52_p2, %s707_s15, %s54_s25  }
  0x25   : > { %s463_s9 = sshll.u32 %s723_s19, 7  ;;  %s125_s10 = scalar_lea.vmem [#allocation4], %s461_s7 }
  0x26   : > { %s136_s11 = sshll.u32 %s125_s10, 4  ;;  %s133_s12 = sadd.s32 %s463_s9, %s462_s8  ;;  %s137_s11 = int_to_ptr.vmem [resolvable:$true] %s136_s11 }
  0x27   : > { %s464_s13 = sshll.u32 %s133_s12, 7  ;;  %p838_p5 = pnand %p518_p4, %p807_p8 }
  0x28   : > { %s135_s30 = scalar_lea.hbm %s1018_s1, %s464_s13  ;;  %s122_s25 = scalar_lea.sflag [#allocation5], %s121_s5 }
  0x29   : > { %p603_p6 = pneg %p838_p5  ;;  %s614_s3 = scalar_lea.vmem %s137_s11, 2048 }
  0x2a   : > { %p615_p7 = scmp.ne.s32.totalorder %s137_s11, %s614_s3  ;;  %s730_s7 = smov [#allocation4]  }
  0x2b   : > { %s619_s8 = sshll.u32 %s730_s7, 4  ;;  %s620_s8 = int_to_ptr.vmem [resolvable:$false] %s619_s8 }
  0x2c   : > { %p617_p9 = pnand %p615_p7, %p603_p6  ;;  %s621_s27 = scalar_lea.vmem %s620_s8, 4096 }
  0x2d   : > { %p622_p8 = scmp.lt.s32.totalorder %s137_s11, %s620_s8  ;;  %p623_p11 = scmp.lt.s32.totalorder %s621_s27, %s614_s3 }
  0x2e   : > { %p618_p10 = pneg %p617_p9 }
  0x2f   : > { %p624_p12 = por %p623_p11, %p622_p8 }
  0x31   : > { %p625_p1 = pnand %p624_p12, %p618_p10 }
  0x33   : > { %628 = shalt.err (!%p625_p1)
}
  0x34   : > { %s731_s9 = smov 128   ;;  %s732_s5 = smov 8  }
  0x35   : > { %513 = dma.hbm_to_vmem [thread:$0]  (!%p838_p5), %s135_s30, 2048, %s137_s11, %s122_s25, %s731_s9, %s731_s9, %s732_s5  }
  0x36   : > { %p465_p2 = scmp.ge.s32.totalorder %s727_s20, 1  ;;  %p144_p4 = scmp.lt.s32.totalorder %s727_s20, 17 }
  0x38   : > { %p145_p6 = pnand %p465_p2, %p144_p4 }
  0x39   : > { %s852_s10 = sand.u32 (!%p145_p6), 1, %s703_s0  }
  0x3a   : > { %148 = sbr.rel (%p145_p6) target bundleno = 116 (0x74), region = 24  ;;  %s466_s12 = sshll.u32 (!%p145_p6), %s852_s10, 7 }
  0x3b   : > { %s151_s13 = scalar_lea.sflag (!%p145_p6), [#allocation5], %s852_s10  ;;  %s858_s22 = scalar_lea.vmem (!%p145_p6), [#allocation4], %s466_s12 }
  0x3f   : > { %690 = dma.done.wait (%p815_p13), %s151_s13, 2048  }
  0x40   : > { %692 = vsyncadd (%p815_p13), %s151_s13, 4294965248  ;;  %v177_v0 = vlaneseq  ;;  %s175_s11 = sld [smem:[#allocation3 + %s711_s16]]  ;;  %v294_v19 = vld [vmem:[%s858_s22] sm:$0xff]  ;;  %v295_v25 = vld [vmem:[%s858_s22 + $0x8] sm:$0xff]  ;;  %s896_s28 = scalar_lea.vmem [#allocation7], %s466_s12 }
  0x41   : > { %v296_v30 = vld [vmem:[%s858_s22 + $0x10] sm:$0xff]  ;;  %v297_v32 = vld [vmem:[%s858_s22 + $0x18] sm:$0xff]  ;;  %v298_v36 = vld [vmem:[%s858_s22 + $0x20] sm:$0xff]  ;;  %s501_s21 = sshll.u32 %s711_s16, 4  ;;  %s502_s26 = sshll.u32 %s715_s17, 7 }
  0x42   : > { %v865_v1 = vshrl.u32 %v177_v0, 7  ;;  %v867_v2 = vand.u32 127, %v177_v0  ;;  %v299_v45 = vld [vmem:[%s858_s22 + $0x28] sm:$0xff]  ;;  %v300_v55 = vld [vmem:[%s858_s22 + $0x30] sm:$0xff]  ;;  %v301_v60 = vld [vmem:[%s858_s22 + $0x38] sm:$0xff]  ;;  %s357_s16 = sadd.s32 %s502_s26, %s501_s21  ;;  %s360_s17 = sshll.u32 %s896_s28, 4  ;;  %s958_s17 = int_to_ptr.vmem [resolvable:$true] %s360_s17 }
  0x43   : > { %s503_s30 = sshll.u32 %s357_s16, 7  ;;  %s343_s8 = scalar_lea.sflag [#allocation6], %s852_s10 }
  0x44   : > { %v213_v3 = vsub.s32 %v867_v2, %v865_v1  ;;  %v179_v4 = vadd.s32 8, %v865_v1  ;;  %v180_v5 = vadd.s32 16, %v865_v1  ;;  %v181_v6 = vadd.s32 24, %v865_v1  ;;  %s963_s7 = scalar_lea.hbm %s1019_s2, %s503_s30  ;;  %s629_s27 = scalar_lea.vmem %s958_s17, 2048 }
  0x45   : > { %v182_v7 = vadd.s32 32, %v865_v1  ;;  %v183_v8 = vadd.s32 40, %v865_v1  ;;  %v184_v9 = vadd.s32 48, %v865_v1  ;;  %v185_v10 = vadd.s32 56, %v865_v1  ;;  %p630_p13 = scmp.ne.s32.totalorder %s958_s17, %s629_s27  ;;  %s733_s9 = smov [#allocation7]  }
  0x46   : > { %vm229_vm0 = vcmp.lt.s32.totalorder %v213_v3, 0  ;;  %v468_v11 = vcvt.s32.f32 %v213_v3  ;;  %v214_v12 = vsub.s32 %v867_v2, %v179_v4  ;;  %v215_v13 = vsub.s32 %v867_v2, %v180_v5  ;;  %s633_s5 = sshll.u32 %s733_s9, 4  ;;  %s634_s5 = int_to_ptr.vmem [resolvable:$false] %s633_s5 }
  0x47   : > { %v880_v14 = vstv %s175_s11  ;;  %v216_v15 = vsub.s32 %v867_v2, %v181_v6  ;;  %v217_v16 = vsub.s32 %v867_v2, %v182_v7  ;;  %v218_v17 = vsub.s32 %v867_v2, %v183_v8  ;;  %v302_v6 = vld [vmem:[%s858_s22 + $0x40] sm:$0xff]  ;;  %p631_p5 = pnand %p630_p13, %p819_p0  ;;  %s635_s12 = scalar_lea.vmem %s634_s5, 4096 }
  0x48   : > { %v469_v18 = vsel %vm229_vm0, %v468_v11, 0.0  ;;  %vm231_vm1 = vcmp.lt.s32.totalorder %v214_v12, 0  ;;  %v470_v20 = vcvt.s32.f32 %v214_v12  ;;  %vm233_vm2 = vcmp.lt.s32.totalorder %v215_v13, 0  ;;  %p636_p9 = scmp.lt.s32.totalorder %s958_s17, %s634_s5  ;;  %p637_p10 = scmp.lt.s32.totalorder %s635_s12, %s629_s27 }
  0x49   : > { %v278_v21 = vmul.f32 %v469_v18, %v880_v14  ;;  %v472_v22 = vcvt.s32.f32 %v215_v13  ;;  %vm235_vm3 = vcmp.lt.s32.totalorder %v216_v15, 0  ;;  %v474_v23 = vcvt.s32.f32 %v216_v15  ;;  %p632_p7 = pneg %p631_p5 }
  0x4a   : > { %v471_v24 = vsel %vm231_vm1, %v470_v20, 0.0  ;;  %vm237_vm4 = vcmp.lt.s32.totalorder %v217_v16, 0  ;;  %v476_v26 = vcvt.s32.f32 %v217_v16  ;;  %vm239_vm5 = vcmp.lt.s32.totalorder %v218_v17, 0  ;;  %p638_p8 = por %p637_p10, %p636_p9 }
  0x4b   : > { %v310_v27 = vadd.f32 %v294_v19, %v278_v21  ;;  %v279_v28 = vmul.f32 %v471_v24, %v880_v14  ;;  %v473_v29 = vsel %vm233_vm2, %v472_v22, 0.0  ;;  %v475_v31 = vsel %vm235_vm3, %v474_v23, 0.0  ;;  %v304_v22 = vld [vmem:[%s858_s22 + $0x50] sm:$0xff]  ;;  %v305_v24 = vld [vmem:[%s858_s22 + $0x58] sm:$0xff] }
  0x4c   : > { %v280_v33 = vmul.f32 %v473_v29, %v880_v14  ;;  %v281_v34 = vmul.f32 %v475_v31, %v880_v14  ;;  %v477_v35 = vsel %vm237_vm4, %v476_v26, 0.0  ;;  %v478_v37 = vcvt.s32.f32 %v218_v17  ;;  %v303_v17 = vld [vmem:[%s858_s22 + $0x48] sm:$0xff]  ;;  %p639_p11 = pnand %p638_p8, %p632_p7 }
  0x4d   : > { %326 = vst [vmem:[%s896_s28] sm:$0xff] %v310_v27  ;;  %v311_v38 = vadd.f32 %v295_v25, %v279_v28  ;;  %v282_v39 = vmul.f32 %v477_v35, %v880_v14  ;;  %v219_v40 = vsub.s32 %v867_v2, %v184_v9  ;;  %v220_v41 = vsub.s32 %v867_v2, %v185_v10  ;;  %v306_v35 = vld [vmem:[%s858_s22 + $0x60] sm:$0xff] }
  0x4e   : > { %v312_v42 = vadd.f32 %v296_v30, %v280_v33  ;;  %v313_v43 = vadd.f32 %v297_v32, %v281_v34  ;;  %v479_v44 = vsel %vm239_vm5, %v478_v37, 0.0  ;;  %v186_v46 = vadd.s32 64, %v865_v1 }
  0x4f   : > { %327 = vst [vmem:[%s896_s28 + $0x8] sm:$0xff] %v311_v38  ;;  %v314_v47 = vadd.f32 %v298_v36, %v282_v39  ;;  %v283_v48 = vmul.f32 %v479_v44, %v880_v14  ;;  %vm241_vm6 = vcmp.lt.s32.totalorder %v219_v40, 0  ;;  %v480_v49 = vcvt.s32.f32 %v219_v40  ;;  %v307_v39 = vld [vmem:[%s858_s22 + $0x68] sm:$0xff]  ;;  %v308_v44 = vld [vmem:[%s858_s22 + $0x70] sm:$0xff] }
  0x50   : > { %328 = vst [vmem:[%s896_s28 + $0x10] sm:$0xff] %v312_v42  ;;  %329 = vst [vmem:[%s896_s28 + $0x18] sm:$0xff] %v313_v43  ;;  %vm243_vm7 = vcmp.lt.s32.totalorder %v220_v41, 0  ;;  %v482_v50 = vcvt.s32.f32 %v220_v41  ;;  %v221_v51 = vsub.s32 %v867_v2, %v186_v46  ;;  %v187_v52 = vadd.s32 72, %v865_v1 }
  0x51   : > { %330 = vst [vmem:[%s896_s28 + $0x20] sm:$0xff] %v314_v47  ;;  %v315_v53 = vadd.f32 %v299_v45, %v283_v48  ;;  %v481_v54 = vsel %vm241_vm6, %v480_v49, 0.0  ;;  %v188_v56 = vadd.s32 80, %v865_v1  ;;  %v189_v57 = vadd.s32 88, %v865_v1 }
  0x52   : > { %v284_v58 = vmul.f32 %v481_v54, %v880_v14  ;;  %v483_v59 = vsel %vm243_vm7, %v482_v50, 0.0  ;;  %vm245_vm8 = vcmp.lt.s32.totalorder %v221_v51, 0  ;;  %v484_v61 = vcvt.s32.f32 %v221_v51  ;;  %v309_v50 = vld [vmem:[%s858_s22 + $0x78] sm:$0xff] }
  0x53   : > { %331 = vst [vmem:[%s896_s28 + $0x28] sm:$0xff] %v315_v53  ;;  %v285_v62 = vmul.f32 %v483_v59, %v880_v14  ;;  %v222_v63 = vsub.s32 %v867_v2, %v187_v52  ;;  %v223_v0 = vsub.s32 %v867_v2, %v188_v56  ;;  %v224_v3 = vsub.s32 %v867_v2, %v189_v57 }
  0x54   : > { %v316_v4 = vadd.f32 %v300_v55, %v284_v58  ;;  %v485_v5 = vsel %vm245_vm8, %v484_v61, 0.0  ;;  %v190_v7 = vadd.s32 96, %v865_v1  ;;  %v191_v8 = vadd.s32 104, %v865_v1 }
  0x55   : > { %v317_v9 = vadd.f32 %v301_v60, %v285_v62  ;;  %v286_v10 = vmul.f32 %v485_v5, %v880_v14  ;;  %vm247_vm9 = vcmp.lt.s32.totalorder %v222_v63, 0  ;;  %v486_v11 = vcvt.s32.f32 %v222_v63 }
  0x56   : > { %332 = vst [vmem:[%s896_s28 + $0x30] sm:$0xff] %v316_v4  ;;  %vm249_vm10 = vcmp.lt.s32.totalorder %v223_v0, 0  ;;  %v488_v12 = vcvt.s32.f32 %v223_v0  ;;  %vm251_vm11 = vcmp.lt.s32.totalorder %v224_v3, 0  ;;  %v490_v13 = vcvt.s32.f32 %v224_v3 }
  0x57   : > { %333 = vst [vmem:[%s896_s28 + $0x38] sm:$0xff] %v317_v9  ;;  %v318_v15 = vadd.f32 %v302_v6, %v286_v10  ;;  %v487_v16 = vsel %vm247_vm9, %v486_v11, 0.0  ;;  %v225_v18 = vsub.s32 %v867_v2, %v190_v7  ;;  %v226_v19 = vsub.s32 %v867_v2, %v191_v8 }
  0x58   : > { %v287_v20 = vmul.f32 %v487_v16, %v880_v14  ;;  %v489_v21 = vsel %vm249_vm10, %v488_v12, 0.0  ;;  %v491_v23 = vsel %vm251_vm11, %v490_v13, 0.0  ;;  %v192_v25 = vadd.s32 112, %v865_v1 }
  0x59   : > { %334 = vst [vmem:[%s896_s28 + $0x40] sm:$0xff] %v318_v15  ;;  %v288_v26 = vmul.f32 %v489_v21, %v880_v14  ;;  %v289_v27 = vmul.f32 %v491_v23, %v880_v14  ;;  %vm253_vm12 = vcmp.lt.s32.totalorder %v225_v18, 0  ;;  %v492_v28 = vcvt.s32.f32 %v225_v18 }
  0x5a   : > { %v319_v29 = vadd.f32 %v303_v17, %v287_v20  ;;  %vm255_vm13 = vcmp.lt.s32.totalorder %v226_v19, 0  ;;  %v494_v30 = vcvt.s32.f32 %v226_v19  ;;  %v227_v31 = vsub.s32 %v867_v2, %v192_v25 }
  0x5b   : > { %v320_v32 = vadd.f32 %v304_v22, %v288_v26  ;;  %v321_v33 = vadd.f32 %v305_v24, %v289_v27  ;;  %v493_v34 = vsel %vm253_vm12, %v492_v28, 0.0  ;;  %v193_v36 = vadd.s32 120, %v865_v1 }
  0x5c   : > { %335 = vst [vmem:[%s896_s28 + $0x48] sm:$0xff] %v319_v29  ;;  %v290_v37 = vmul.f32 %v493_v34, %v880_v14  ;;  %v495_v38 = vsel %vm255_vm13, %v494_v30, 0.0  ;;  %vm257_vm14 = vcmp.lt.s32.totalorder %v227_v31, 0  ;;  %v496_v40 = vcvt.s32.f32 %v227_v31 }
  0x5d   : > { %336 = vst [vmem:[%s896_s28 + $0x50] sm:$0xff] %v320_v32  ;;  %337 = vst [vmem:[%s896_s28 + $0x58] sm:$0xff] %v321_v33  ;;  %v291_v41 = vmul.f32 %v495_v38, %v880_v14  ;;  %v228_v42 = vsub.s32 %v867_v2, %v193_v36 }
  0x5e   : > { %v322_v1 = vadd.f32 %v306_v35, %v290_v37  ;;  %v497_v43 = vsel %vm257_vm14, %v496_v40, 0.0 }
  0x5f   : > { %v323_v45 = vadd.f32 %v307_v39, %v291_v41  ;;  %v292_v46 = vmul.f32 %v497_v43, %v880_v14  ;;  %vm259_vm15 = vcmp.lt.s32.totalorder %v228_v42, 0  ;;  %v498_v47 = vcvt.s32.f32 %v228_v42 }
  0x60   : > { %338 = vst [vmem:[%s896_s28 + $0x60] sm:$0xff] %v322_v1 }
  0x61   : > { %339 = vst [vmem:[%s896_s28 + $0x68] sm:$0xff] %v323_v45  ;;  %v324_v48 = vadd.f32 %v308_v44, %v292_v46  ;;  %v499_v49 = vsel %vm259_vm15, %v498_v47, 0.0 }
  0x62   : > { %v293_v2 = vmul.f32 %v499_v49, %v880_v14 }
  0x63   : > { %340 = vst [vmem:[%s896_s28 + $0x70] sm:$0xff] %v324_v48 }
  0x64   : > { %v325_v51 = vadd.f32 %v309_v50, %v293_v2 }
  0x66   : > { %341 = vst [vmem:[%s896_s28 + $0x78] sm:$0xff] %v325_v51 }
  0x67   : > { %642 = shalt.err (!%p639_p11)
}
  0x68   : > { %s643_s13 = scalar_lea.hbm %s963_s7, 2048  ;;  %s647_s28 = scalar_lea.hbm %s1019_s2, 32768 }
  0x69   : > { %p644_p12 = scmp.ne.s32.totalorder %s963_s7, %s643_s13  ;;  %p648_p4 = scmp.lt.s32.totalorder %s963_s7, %s1019_s2 }
  0x6a   : > { %p649_p6 = scmp.lt.s32.totalorder %s647_s28, %s643_s13 }
  0x6b   : > { %p645_p1 = pnand %p644_p12, %p819_p0 }
  0x6c   : > { %p650_p13 = por %p649_p6, %p648_p4 }
  0x6d   : > { %p646_p2 = pneg %p645_p1 }
  0x6f   : > { %p651_p5 = pnand %p650_p13, %p646_p2 }
  0x71   : > { %654 = shalt.err (!%p651_p5)
}
  0x72   : > { %s734_s16 = smov 128   ;;  %s735_s30 = smov 8  }
  0x73   : > { %508 = dma.vmem_to_hbm [thread:$0]  (%p819_p0), %s958_s17, 2048, %s963_s7, %s343_s8, %s734_s16, %s734_s16, %s735_s30  }
  0x74 PF: > { %p519_p7 = scmp.ge.s32.totalorder %s727_s20, 2  ;;  %s375_s25 = sand.u32 1, %s699_s14  }
  0x75   : > { %s376_s3 = scalar_lea.sflag [#allocation6], %s375_s25 }
  0x76   : > { %p515_p9 = pnand %p519_p7, %p825_p3 }
  0x78   : > { %p516_p10 = pneg %p515_p9 }
  0x7a   : > { %694 = dma.done.wait (%p516_p10), %s376_s3, 2048  }
  0x7b   : > { %696 = vsyncadd (%p516_p10), %s376_s3, 4294965248  ;;  %s24_s20 = sadd.s32 1, %s727_s20   ;;  %s1025_s14 = smov %s703_s0 }
  0x7c   : > { %p21_p8 = scmp.ge.s32.totalorder %s24_s20, 18   ;;  %s1026_s0 = smov %s707_s15 }
  0x7d   : > { %s1027_s15 = smov %s832_s6  ;;  %s1028_s16 = smov %s719_s18 }
  0x7e   : > { %s1029_s17 = smov %s723_s19  ;;  %s1030_s18 = smov %s1033_s23 }
  0x7f   : > { %s1031_s19 = smov %s1037_s24  ;;  %23 = sbr.rel (!%p21_p8) target bundleno = 22 (0x16), region = 69 }
  0x84   :  { %381 = vsyncpa [#allocation5], 1 }
  0x85   :  { %383 = vsyncpa [#allocation5 + $0x1], 1 }
  0x86   :  { %384 = vsyncpa [#allocation6], 1 }
  0x87   :  { %386 = vsyncpa [#allocation6 + $0x1], 1 }

</bundles_post_ra>
